<compile_context>
chip_gen: v5e
topology: v5e:2x2
jax: 0.10.0
libtpu: 0.0.40
codegen_flags: <defaults>
</compile_context>

<pallas_src>
import functools

import numpy as np

import jax
import jax.numpy as jnp
from jax.experimental import pallas as pl
from jax.experimental.pallas import tpu as pltpu


def _shortcut_kernel(x_ref, sel_ref, o_ref, *, pad):
    # x_ref:   (B, C, K)         even-H rows only, flattened (h_out * W)
    # sel_ref: (K, Ho*Wo)        exact 0/1 one-hot selecting stride-2 W cols
    # o_ref:   (B, C_out, Ho*Wo) C_out = C + 2*pad
    b, c, k = x_ref.shape
    s_out = sel_ref.shape[1]

    # Merge batch and channel into the MXU M dimension (layout-free when C is
    # a multiple of 8, which holds for real ResNet shapes).
    x2 = x_ref[...].reshape(b * c, k)
    acc = jnp.dot(x2, sel_ref[...], preferred_element_type=jnp.float32)
    sub = acc.reshape(b, c, s_out).astype(o_ref.dtype)

    # Direct slice stores: data channels in the middle, zero pad rows around.
    o_ref[:, pad:pad + c, :] = sub
    if pad > 0:
        zeros = jnp.zeros((b, pad, s_out), dtype=o_ref.dtype)
        o_ref[:, :pad, :] = zeros
        o_ref[:, pad + c:, :] = zeros


@functools.lru_cache(maxsize=None)
def _selection_matrix(W, h_out, w_out, dtype_name):
    """Host-side numpy constant: sel[i*W + j, a*w_out + b] = 1 iff i==a, j==2b."""
    k = h_out * W
    s_out = h_out * w_out
    rows = np.arange(k)
    cols = np.arange(s_out)
    ri, rj = rows // W, rows % W
    ca, cb = cols // w_out, cols % w_out
    sel = (ri[:, None] == ca[None, :]) & (rj[:, None] == 2 * cb[None, :])
    return np.asarray(sel, dtype=np.dtype(dtype_name))


def _pick_batch_block(N, C):
    # Target B*C ~ 256 MXU rows (fills v6e/v7x; >=128 also covers v5e).
    B = max(1, min(N, 256 // max(C, 1)))
    if N >= 2:
        # Keep the grid length >= 2 so v7x's two TensorCores both get work.
        B = max(1, min(B, N // 2))
    # Shrink to a divisor of N so every block is full (no ragged last step).
    while N % B:
        B -= 1
    return B


def lambda_layer_option_a(x, planes):
    """x: (N, C, H, W) -> (N, C + 2*(planes//4), ceil(H/2), ceil(W/2))."""
    N, C, H, W = x.shape
    pad = planes // 4
    c_out = C + 2 * pad
    h_out = (H + 1) // 2
    w_out = (W + 1) // 2
    k = h_out * W          # contraction length (odd-H rows dropped wrapper-side)
    s_out = h_out * w_out

    # Wrapper-side H subsample + spatial flatten: halves both the kernel's
    # input DMA bytes and the MXU K cycles.
    x_even = x[:, :, ::2, :].reshape(N, C, k)

    # One-hot W-selection matrix (host constant, cached per shape/dtype).
    sel = jnp.asarray(_selection_matrix(W, h_out, w_out, jnp.dtype(x.dtype).name))

    B = _pick_batch_block(N, C)
    kernel = functools.partial(_shortcut_kernel, pad=pad)

    itemsize = jnp.dtype(x.dtype).itemsize
    cost = pl.CostEstimate(
        flops=2 * N * C * k * s_out,
        transcendentals=0,
        bytes_accessed=(x_even.size + sel.size + N * c_out * s_out) * itemsize,
    )

    out_flat = pl.pallas_call(
        kernel,
        out_shape=jax.ShapeDtypeStruct((N, c_out, s_out), x.dtype),
        grid=(N // B,),
        in_specs=[
            # B batch elements' real channels, even-H rows, flattened spatial.
            pl.BlockSpec((B, C, k), lambda n: (n, 0, 0)),
            # Selection matrix: constant block index -> stays resident in VMEM.
            pl.BlockSpec((k, s_out), lambda n: (0, 0)),
        ],
        out_specs=pl.BlockSpec((B, c_out, s_out), lambda n: (n, 0, 0)),
        compiler_params=pltpu.CompilerParams(
            dimension_semantics=("parallel",)),
        cost_estimate=cost,
    )(x_even, sel)

    return out_flat.reshape(N, c_out, h_out, w_out)


if __name__ == "__main__":
    # Small shapes consistent with the ResNet shortcut usage:
    # in_planes = 4 -> planes = 8 -> pad = 2 each side -> C_out = 8.
    N, C, H, W = 2, 4, 16, 16
    planes = 2 * C

    key = jax.random.PRNGKey(0)
    x = jax.random.normal(key, (N, C, H, W), dtype=jnp.float32)

    out = lambda_layer_option_a(x, planes)
    out = jax.block_until_ready(out)

    # Pure-JAX reference of the PyTorch lambda.
    pad = planes // 4
    ref = jnp.pad(x[:, :, ::2, ::2], ((0, 0), (pad, pad), (0, 0), (0, 0)))

    assert out.shape == ref.shape, (out.shape, ref.shape)
    assert out.dtype == ref.dtype
    assert jnp.allclose(out, ref, atol=1e-6), float(jnp.abs(out - ref).max())
    print("KERNEL_OK")
</pallas_src>

<mosaic_0001>
module attributes {stable_mosaic.version = 11 : i64} {
  func.func @_shortcut_kernel(%arg0: i32, %arg1: memref<1x4x128xf32, #tpu.memory_space<vmem>>, %arg2: memref<128x64xf32, #tpu.memory_space<vmem>>, %arg3: memref<1x8x64xf32, #tpu.memory_space<vmem>>) attributes {dimension_semantics = [#tpu.dimension_semantics<parallel>], iteration_bounds = array<i64: 2>, scalar_prefetch = 0 : i64, scratch_operands = 0 : i64, tpu.core_type = #tpu.core_type<tc>, window_params = [{transform_indices = @transform_0, window_bounds = array<i64: 1, 4, 128>}, {pipeline_mode = #tpu.pipeline_mode<synchronous>, transform_indices = @transform_1, window_bounds = array<i64: 128, 64>}, {transform_indices = @transform_2, window_bounds = array<i64: 1, 8, 64>}]} {
    %c0 = arith.constant 0 : index
    %c0_0 = arith.constant 0 : index
    %c0_1 = arith.constant 0 : index
    %0 = vector.load %arg1[%c0, %c0_0, %c0_1] : memref<1x4x128xf32, #tpu.memory_space<vmem>>, vector<1x4x128xf32>
    %1 = vector.shape_cast %0 : vector<1x4x128xf32> to vector<4x128xf32>
    %c0_2 = arith.constant 0 : index
    %c0_3 = arith.constant 0 : index
    %2 = vector.load %arg2[%c0_2, %c0_3] : memref<128x64xf32, #tpu.memory_space<vmem>>, vector<128x64xf32>
    %cst = arith.constant dense<0.000000e+00> : vector<4x64xf32>
    %3 = tpu.matmul %1, %2, %cst {dimension_numbers = #tpu.dot_dimension_numbers<[1], [0], [0], [1], [0, 0, 1, 1], [], []>} : vector<4x128xf32>, vector<128x64xf32>, vector<4x64xf32> -> vector<4x64xf32>
    %4 = vector.shape_cast %3 : vector<4x64xf32> to vector<1x4x64xf32>
    %c0_4 = arith.constant 0 : index
    %c2 = arith.constant 2 : index
    %c0_5 = arith.constant 0 : index
    %5 = vector.load %arg3[%c0_4, %c2, %c0_5] : memref<1x8x64xf32, #tpu.memory_space<vmem>>, vector<1x4x64xf32>
    tpu.vector_store %arg3[%c0_4, %c2, %c0_5], %4 {strides = array<i32>} : memref<1x8x64xf32, #tpu.memory_space<vmem>>, vector<1x4x64xf32>,
    %cst_6 = arith.constant 0.000000e+00 : f32
    %6 = vector.broadcast %cst_6 : f32 to vector<1x2x64xf32>
    %c0_7 = arith.constant 0 : index
    %c0_8 = arith.constant 0 : index
    %c0_9 = arith.constant 0 : index
    %7 = vector.load %arg3[%c0_7, %c0_8, %c0_9] : memref<1x8x64xf32, #tpu.memory_space<vmem>>, vector<1x2x64xf32>
    tpu.vector_store %arg3[%c0_7, %c0_8, %c0_9], %6 {strides = array<i32>} : memref<1x8x64xf32, #tpu.memory_space<vmem>>, vector<1x2x64xf32>,
    %c0_10 = arith.constant 0 : index
    %c6 = arith.constant 6 : index
    %c0_11 = arith.constant 0 : index
    %8 = vector.load %arg3[%c0_10, %c6, %c0_11] : memref<1x8x64xf32, #tpu.memory_space<vmem>>, vector<1x2x64xf32>
    tpu.vector_store %arg3[%c0_10, %c6, %c0_11], %6 {strides = array<i32>} : memref<1x8x64xf32, #tpu.memory_space<vmem>>, vector<1x2x64xf32>,
    return
  }
  func.func @transform_0(%arg0: i32) -> (i32, i32, i32) {
    %c0_i32 = arith.constant 0 : i32
    %c0_i32_0 = arith.constant 0 : i32
    %c0_i32_1 = arith.constant 0 : i32
    return %arg0, %c0_i32, %c0_i32_0 : i32, i32, i32
  }
  func.func @transform_1(%arg0: i32) -> (i32, i32) {
    %c0_i32 = arith.constant 0 : i32
    %c0_i32_0 = arith.constant 0 : i32
    %c0_i32_1 = arith.constant 0 : i32
    return %c0_i32, %c0_i32_0 : i32, i32
  }
  func.func @transform_2(%arg0: i32) -> (i32, i32, i32) {
    %c0_i32 = arith.constant 0 : i32
    %c0_i32_0 = arith.constant 0 : i32
    %c0_i32_1 = arith.constant 0 : i32
    return %arg0, %c0_i32, %c0_i32_0 : i32, i32, i32
  }
}

</mosaic_0001>

<bundles_post_ra>
// kernel: tpu_custom_call.1
= control target key start
LH: loop header
LB: loop body
LE: loop exit
PB: predicated region body
PF: predicated region fallthrough
CT: control target
= control target key end

     0   :  { %7 = vsyncpa [#allocation3], 0  ;;  %s519_s0 = inlined_call_operand.vmem [shape: f32[2,4,128], index: 0, kind: input, shape index: {}]   ;;  %s520_s1 = inlined_call_operand.vmem [shape: f32[128,64], index: 1, kind: input, shape index: {}]   ;;  %s521_s2 = inlined_call_operand.hbm [shape: f32[2,8,64], index: 2, kind: output, shape index: {}]  }
   0x1   :  { %9 = vsyncpa [#allocation3 + $0x1], 0  ;;  %s386_s9 = smov 0   ;;  %s388_s10 = smov 0  }
   0x2   :  { %s390_s11 = smov 0   ;;  %s392_s12 = smov 0  }
   0x3 LB: > { %s407_s13 = sadd.s32 4294967295, %s368_s12   ;;  %s256_s14 = sadd.s32 4294967294, %s368_s12   ;;  %s368_s12 = sphi %s392_s12, %s527_s12   ;;  %s364_s11 = sphi %s390_s11, %s526_s11   ;;  %s360_s10 = sphi %s388_s10, %s525_s10   ;;  %s356_s9 = sphi %s386_s9, %s524_s9  }
   0x4   : > { %s411_s15 = sadd.s32 1, %s368_s12   ;;  %s69_s16 = sadd.s32 1, %s364_s11 }
   0x5   : > { %s66_s17 = ssub.s32 %s368_s12, %s411_s15  ;;  %p79_p0 = scmp.ne.s32.totalorder %s364_s11, %s360_s10 }
   0x6   : > { %p67_p1 = scmp.eq.s32.totalorder %s66_s17, 0  ;;  %p80_p2 = scmp.eq.s32.totalorder %s407_s13, 1 }
   0x7   : > { %p85_p3 = scmp.ne.s32.totalorder %s360_s10, %s356_s9  ;;  %p86_p4 = scmp.eq.s32.totalorder %s256_s14, 1 }
   0x8   : > { %s422_s18 = scalar_select %p67_p1, %s364_s11, %s69_s16  }
   0x9   : > { %p424_p5 = por %p80_p2, %p79_p0  ;;  %p428_p6 = por %p86_p4, %p85_p3 }
   0xa   : > { %p259_p7 = scmp.ge.s32.totalorder %s368_s12, 1  ;;  %p114_p8 = scmp.lt.s32.totalorder %s368_s12, 3 }
   0xc   : > { %p115_p9 = pnand %p259_p7, %p114_p8 }
   0xd   : > { %p135_p10 = scmp.lt.s32.totalorder (!%p115_p9), %s407_s13, 1  ;;  %s132_s17 = sand.u32 (!%p115_p9), 1, %s360_s10  }
   0xe   : > { %118 = sbr.rel (%p115_p9) target bundleno = 180 (0xb4), region = 28  ;;  %s260_s21 = sshll.u32 (!%p115_p9), %s132_s17, 3 }
   0xf   : > { %s134_s22 = scalar_lea.vmem (!%p115_p9), [#allocation2], %s260_s21  ;;  %s263_s23 = sshll.u32 (!%p115_p9), %s407_s13, 3 }
  0x10   : > { %s192_s26 = scalar_lea.hbm (!%p115_p9), %s521_s2, %s263_s23  ;;  %s194_s27 = sshll.u32 (!%p115_p9), %s134_s22, 4  ;;  %s195_s27 = int_to_ptr.vmem [resolvable:$true] %s194_s27 }
  0x11   : > { %s196_s28 = sshll.u32 (!%p115_p9), %s192_s26, 4  ;;  %s326_s5 = scalar_lea.hbm (!%p115_p9), %s521_s2, 16  ;;  %s197_s28 = int_to_ptr.hbm [resolvable:$true] %s196_s28 }
  0x12   : > { %s320_s30 = sshra.s32 (!%p115_p9), %s197_s28, 4  ;;  %s321_s30 = int_to_ptr.hbm [resolvable:$true] %s320_s30 }
  0x13   : > { %v155_v0 = vld [vmem:[%s520_s1 + $0x78] sm:$0xff]  ;;  %v154_v1 = vld [vmem:[%s520_s1 + $0x70] sm:$0xff]  ;;  %v153_v2 = vld [vmem:[%s520_s1 + $0x68] sm:$0xff]  ;;  %s136_s24 = scalar_select %p135_p10, %s407_s13, 1  ;;  %vm178_vm0 = vcmask 517120   ;;  %v370_v17 = vmov 0.0  }
  0x14   : > { %156 = vmatpush.msra.mxu0 %v155_v0  ;;  %v152_v3 = vld [vmem:[%s520_s1 + $0x60] sm:$0xff]  ;;  %v151_v4 = vld [vmem:[%s520_s1 + $0x58] sm:$0xff]  ;;  %v150_v5 = vld [vmem:[%s520_s1 + $0x50] sm:$0xff]  ;;  %179 = vst.msk [vmem:[%s134_s22] sm:$0x3] %vm178_vm0, %v370_v17  ;;  %vm176_vm1 = vcmask 519168   ;;  %p327_p0 = scmp.lt.s32.totalorder %s321_s30, %s521_s2 }
  0x15   : > { %v149_v6 = vld [vmem:[%s520_s1 + $0x48] sm:$0xff]  ;;  %v148_v7 = vld [vmem:[%s520_s1 + $0x40] sm:$0xff]  ;;  %v147_v8 = vld [vmem:[%s520_s1 + $0x38] sm:$0xff]  ;;  %s261_s29 = sshll.u32 %s136_s24, 2  ;;  %180 = vst.msk [vmem:[%s134_s22 + $0x6] sm:$0x3] %vm178_vm0, %v370_v17 }
  0x16   : > { %157 = vmatpush.msra.mxu0 %v154_v1  ;;  %v146_v9 = vld [vmem:[%s520_s1 + $0x30] sm:$0xff]  ;;  %v145_v10 = vld [vmem:[%s520_s1 + $0x28] sm:$0xff]  ;;  %v144_v11 = vld [vmem:[%s520_s1 + $0x20] sm:$0xff]  ;;  %s138_s8 = scalar_lea.vmem %s519_s0, %s261_s29  ;;  %s182_s29 = scalar_lea.sflag [#allocation3], %s132_s17 }
  0x17   : > { %v143_v12 = vld [vmem:[%s520_s1 + $0x18] sm:$0xff]  ;;  %v142_v13 = vld [vmem:[%s520_s1 + $0x10] sm:$0xff]  ;;  %v141_v14 = vld [vmem:[%s520_s1 + $0x8] sm:$0xff]  ;;  %s322_s3 = scalar_lea.hbm %s321_s30, 8 }
  0x18   : > { %158 = vmatpush.msra.mxu0 %v153_v2  ;;  %v140_v15 = vld [vmem:[%s520_s1] sm:$0xff]  ;;  %p323_p11 = scmp.ne.s32.totalorder %s321_s30, %s322_s3  ;;  %p328_p1 = scmp.lt.s32.totalorder %s326_s5, %s322_s3 }
  0x19   : > { %v139_v16 = vld [vmem:[%s138_s8] sm:$0xf] }
  0x1a   : > { %159 = vmatpush.msra.mxu0 %v152_v3  ;;  %p324_p12 = pnand %p323_p11, %p424_p5  ;;  %p329_p2 = por %p328_p1, %p327_p0 }
  0x1c   : > { %160 = vmatpush.msra.mxu0 %v151_v4  ;;  %p325_p13 = pneg %p324_p12 }
  0x1e   : > { %161 = vmatpush.msra.mxu0 %v150_v5  ;;  %p330_p3 = pnand %p329_p2, %p325_p13 }
  0x20   : > { %162 = vmatpush.msra.mxu0 %v149_v6 }
  0x22   : > { %163 = vmatpush.msra.mxu0 %v148_v7 }
  0x24   : > { %164 = vmatpush.msra.mxu0 %v147_v8 }
  0x26   : > { %165 = vmatpush.msra.mxu0 %v146_v9 }
  0x28   : > { %166 = vmatpush.msra.mxu0 %v145_v10 }
  0x2a   : > { %167 = vmatpush.msra.mxu0 %v144_v11 }
  0x2c   : > { %168 = vmatpush.msra.mxu0 %v143_v12 }
  0x2e   : > { %169 = vmatpush.msra.mxu0 %v142_v13 }
  0x30   : > { %170 = vmatpush.msra.mxu0 %v141_v14 }
  0x32   : > { %171 = vmatpush.msra.mxu0 %v140_v15 }
  0x33   : > { %172 = vmatmul.f32.vlgmr.msra.gmra.mxu0 %v139_v16 }
  0xb0   : > { %v173_v18 = vpop.f32.mrf.mxu0 }
  0xb1   : > { %177 = vst.msk [vmem:[%s134_s22 + $0x2] sm:$0xf] %vm176_vm1, %v173_v18 }
  0xb2   : > { %333 = shalt.err (!%p330_p3)
}
  0xb3   : > { %266 = dma.vmem_to_hbm [thread:$0]  (%p424_p5), %s195_s27, 128, %s197_s28, %s182_s29  }
  0xb4 PF: > { %p272_p4 = scmp.ge.s32.totalorder %s368_s12, 2  ;;  %s208_s8 = sand.u32 1, %s356_s9  }
  0xb5   : > { %s209_s14 = scalar_lea.sflag [#allocation3], %s208_s8 }
  0xb6   : > { %p269_p7 = pnand %p272_p4, %p428_p6 }
  0xb8   : > { %p270_p8 = pneg %p269_p7 }
  0xba   : > { %351 = dma.done.wait (%p270_p8), %s209_s14, 128  }
  0xbb   : > { %353 = vsyncadd (%p270_p8), %s209_s14, 4294967168  ;;  %p12_p9 = scmp.ge.s32.totalorder %s411_s15, 4   ;;  %s524_s9 = smov %s360_s10 }
  0xbc   : > { %s525_s10 = smov %s364_s11  ;;  %s526_s11 = smov %s422_s18 }
  0xbd   : > { %s527_s12 = smov %s411_s15  ;;  %14 = sbr.rel (!%p12_p9) target bundleno = 3 (0x3), region = 63 }
  0xc2   :  { %215 = vsyncpa [#allocation3], 1 }
  0xc3   :  { %217 = vsyncpa [#allocation3 + $0x1], 1 }

</bundles_post_ra>
